<compile_context>
chip_gen: v7x
topology: tpu7x:2x2x1
jax: 0.10.0
libtpu: 0.0.40
codegen_flags: <defaults>
</compile_context>

<pallas_src>
import jax
import jax.numpy as jnp
from jax.experimental import pallas as pl
from jax.experimental.pallas import tpu as pltpu


def _pick_tile_h(H, C, W, itemsize, vmem_budget):
    """Pick the H-tile: ~2 MiB logits block, bounded by the VMEM budget."""
    # Resident bytes per H-row: 2x double-buffered inputs (logits + int32
    # target) + ~6 f32 (C, *, W) temporaries + a few (*, W) 2-D ones.
    per_row = 2 * C * W * itemsize + 2 * 4 * W + 6 * C * W * 4 + 4 * 4 * W
    t_cap = max(1, vmem_budget // per_row)
    # ~2 MiB logits block amortizes the ~0.35 us per-grid-step overhead.
    t_want = max(1, (2 * 1024 * 1024) // max(1, C * W * itemsize))
    t_h = min(t_cap, t_want)
    if t_h >= H:
        return H
    # Keep the second-minor block dim a multiple of 32 (safe for f32/bf16/int8).
    t32 = (t_h // 32) * 32
    if t32 > 0:
        return min(t32, H)
    t8 = max(8, (t_h // 8) * 8)
    return min(t8, H)


def _make_soft_iou_kernel(H, t_h, j_per_split, needs_mask):
    def kernel(logits_ref, target_ref, inter_ref, union_ref):
        # logits_ref: (1, C, t_h, W) native dtype (f32/bf16)
        # target_ref: (1, t_h, W) int32
        # inter_ref / union_ref: (1, 1, C, 1) f32, VMEM-resident across j
        p = pl.program_id(0)
        j = pl.program_id(2)

        @pl.when(j == 0)
        def _():
            inter_ref[...] = jnp.zeros_like(inter_ref)
            union_ref[...] = jnp.zeros_like(union_ref)

        x = logits_ref[0].astype(jnp.float32)          # (C, t_h, W)
        tgt = target_ref[0]                            # (t_h, W) int32
        c, th, w = x.shape

        if needs_mask:
            row0 = (p * j_per_split + j) * t_h
            rows = jax.lax.broadcasted_iota(jnp.int32, (th, w), 0) + row0
            valid = rows < H                           # (t_h, W) bool
            # Zero padded rows so exp/softmax stay finite.
            x = jnp.where(valid[None], x, 0.0)

        # Softmax over the class planes: elementwise VPU across C, no XLU.
        m = jnp.max(x, axis=0)                         # (t_h, W)
        e = jnp.exp(x - m[None])                       # (C, t_h, W)
        s = jnp.sum(e, axis=0)                         # (t_h, W)
        inv_s = pl.reciprocal(s, approx=True)          # EUP slot
        if needs_mask:
            inv_s = jnp.where(valid, inv_s, 0.0)       # padded rows -> pred = 0
        pred = e * inv_s[None]                         # (C, t_h, W)

        cls = jax.lax.broadcasted_iota(jnp.int32, (c, th, w), 0)
        onehot = tgt[None] == cls                      # (C, t_h, W) bool
        if needs_mask:
            onehot = jnp.logical_and(onehot, valid[None])

        inter_e = jnp.where(onehot, pred, 0.0)
        # pred + onehot - pred*onehot == where(onehot, 1, pred): one select,
        # no f32 one-hot and no third reduction.
        union_e = jnp.where(onehot, 1.0, pred)

        inter_t = jnp.sum(jnp.sum(inter_e, axis=2), axis=1, keepdims=True)  # (C, 1)
        union_t = jnp.sum(jnp.sum(union_e, axis=2), axis=1, keepdims=True)  # (C, 1)

        inter_ref[...] += inter_t[None, None]
        union_ref[...] += union_t[None, None]

    return kernel


def soft_iou_loss(logits, target, *, tile_h=None, hw_splits=2):
    """logits: (N, C, H, W) float (f32/bf16), target: (N, H, W) int -> scalar f32."""
    N, C, H, W = logits.shape
    assert target.shape == (N, H, W)
    itemsize = logits.dtype.itemsize

    # Generation-aware VMEM budget (v7x: 64 MiB, v5e/v6e: 128 MiB physical).
    try:
        vmem_cap = int(pltpu.get_tpu_info().vmem_capacity_bytes)
    except Exception:
        vmem_cap = 64 * 1024 * 1024
    vmem_limit = int(min(vmem_cap * 0.85, vmem_cap - 4 * 1024 * 1024))
    tile_budget = vmem_limit // 2   # headroom for compiler temporaries

    if tile_h is None:
        t_h = _pick_tile_h(H, C, W, itemsize, tile_budget)
    else:
        t_h = min(int(tile_h), H)
        if t_h < H and t_h % 8 != 0:
            raise ValueError("tile_h must be a multiple of 8 or >= H")

    n_j = -(-H // t_h)                      # number of real H tiles
    P = max(1, min(int(hw_splits), n_j))    # HW split -> both v7x TCs busy at N=1
    j_per_split = -(-n_j // P)
    needs_mask = (P * j_per_split * t_h != H)
    needs_clamp = (P * j_per_split > n_j)

    if target.dtype != jnp.int32:
        target = target.astype(jnp.int32)

    def _jg(p, j):
        jg = p * j_per_split + j
        if needs_clamp:
            jg = jnp.minimum(jg, n_j - 1)   # never index a fully-OOB block
        return jg

    logits_idx = lambda p, n, j: (n, 0, _jg(p, j), 0)
    target_idx = lambda p, n, j: (n, _jg(p, j), 0)
    out_idx = lambda p, n, j: (p, n, 0, 0)

    kernel = _make_soft_iou_kernel(H, t_h, j_per_split, needs_mask)

    inter, union = pl.pallas_call(
        kernel,
        out_shape=(
            jax.ShapeDtypeStruct((P, N, C, 1), jnp.float32),
            jax.ShapeDtypeStruct((P, N, C, 1), jnp.float32),
        ),
        grid_spec=pltpu.PrefetchScalarGridSpec(
            num_scalar_prefetch=0,
            grid=(P, N, j_per_split),
            in_specs=[
                pl.BlockSpec((1, C, t_h, W), logits_idx),
                pl.BlockSpec((1, t_h, W), target_idx),
            ],
            out_specs=[
                pl.BlockSpec((1, 1, C, 1), out_idx),
                pl.BlockSpec((1, 1, C, 1), out_idx),
            ],
        ),
        compiler_params=pltpu.CompilerParams(
            dimension_semantics=("parallel", "parallel", "arbitrary"),
            vmem_limit_bytes=vmem_limit,
        ),
    )(logits, target)

    inter = jnp.sum(inter[..., 0], axis=0)   # (N, C): sum the HW-split halves
    union = jnp.sum(union[..., 0], axis=0)   # (N, C)
    loss = inter / (union + 1e-16)
    return -jnp.mean(loss)


def _reference(logits, target):
    # Pure-JAX reference of the PyTorch forward, for verification.
    N, C, H, W = logits.shape
    pred = jax.nn.softmax(logits.astype(jnp.float32), axis=1)
    onehot = jax.nn.one_hot(target, C, axis=1, dtype=jnp.float32)
    inter = (pred * onehot).reshape(N, C, -1).sum(2)
    union = (pred + onehot - pred * onehot).reshape(N, C, -1).sum(2)
    return -(inter / (union + 1e-16)).mean()


if __name__ == "__main__":
    key = jax.random.PRNGKey(0)
    k1, k2, k3, k4 = jax.random.split(key, 4)

    # Test 1: small f32 NCHW, single H tile (t_h == H), no masking.
    N, C, H, W = 2, 4, 16, 16
    logits = jax.random.normal(k1, (N, C, H, W), dtype=jnp.float32)
    target = jax.random.randint(k2, (N, H, W), 0, C, dtype=jnp.int32)
    loss = soft_iou_loss(logits, target)
    jax.block_until_ready(loss)
    ref = _reference(logits, target)
    assert jnp.allclose(loss, ref, atol=1e-3, rtol=1e-3), (loss, ref)

    # Test 2: N=1, ragged H (40) with a forced 16-row tile and the 2-way HW
    # split -> exercises multi-tile accumulation, row masking and the clamped
    # empty tile of the second half.
    N2, C2, H2, W2 = 1, 5, 40, 24
    logits2 = jax.random.normal(k3, (N2, C2, H2, W2), dtype=jnp.float32)
    target2 = jax.random.randint(k4, (N2, H2, W2), 0, C2, dtype=jnp.int32)
    loss2 = soft_iou_loss(logits2, target2, tile_h=16)
    jax.block_until_ready(loss2)
    ref2 = _reference(logits2, target2)
    assert jnp.allclose(loss2, ref2, atol=1e-3, rtol=1e-3), (loss2, ref2)

    # Test 3: bf16 logits travel over HBM at half the bytes; math stays f32.
    loss3 = soft_iou_loss(logits.astype(jnp.bfloat16), target)
    jax.block_until_ready(loss3)
    ref3 = _reference(logits.astype(jnp.bfloat16), target)
    assert jnp.allclose(loss3, ref3, atol=1e-2, rtol=1e-2), (loss3, ref3)

    # Test 4: bf16 + multi-tile + masking path.
    loss4 = soft_iou_loss(logits2.astype(jnp.bfloat16), target2, tile_h=16)
    jax.block_until_ready(loss4)
    ref4 = _reference(logits2.astype(jnp.bfloat16), target2)
    assert jnp.allclose(loss4, ref4, atol=1e-2, rtol=1e-2), (loss4, ref4)

    print("KERNEL_OK")
</pallas_src>

<mosaic_0001>
module attributes {stable_mosaic.version = 11 : i64} {
  func.func @kernel(%arg0: i32, %arg1: i32, %arg2: i32, %arg3: memref<1x4x16x16xf32, #tpu.memory_space<vmem>>, %arg4: memref<1x16x16xi32, #tpu.memory_space<vmem>>, %arg5: memref<1x1x4x1xf32, #tpu.memory_space<vmem>>, %arg6: memref<1x1x4x1xf32, #tpu.memory_space<vmem>>) attributes {dimension_semantics = [#tpu.dimension_semantics<parallel>, #tpu.dimension_semantics<parallel>, #tpu.dimension_semantics<arbitrary>], iteration_bounds = array<i64: 1, 2, 1>, scalar_prefetch = 0 : i64, scratch_operands = 0 : i64, tpu.core_type = #tpu.core_type<tc>, window_params = [{transform_indices = @transform_0, window_bounds = array<i64: 1, 4, 16, 16>}, {transform_indices = @transform_1, window_bounds = array<i64: 1, 16, 16>}, {transform_indices = @transform_2, window_bounds = array<i64: 1, 1, 4, 1>}, {transform_indices = @transform_3, window_bounds = array<i64: 1, 1, 4, 1>}]} {
    %c0_i32 = arith.constant 0 : i32
    %0 = arith.cmpi eq, %arg2, %c0_i32 : i32
    %1 = arith.extui %0 : i1 to i32
    %c0_i32_0 = arith.constant 0 : i32
    %2 = arith.cmpi ne, %1, %c0_i32_0 : i32
    scf.if %2 {
      %cst_30 = arith.constant 0.000000e+00 : f32
      %39 = vector.broadcast %cst_30 : f32 to vector<1x1x4x1xf32>
      %c0_31 = arith.constant 0 : index
      %c0_32 = arith.constant 0 : index
      %c0_33 = arith.constant 0 : index
      %c0_34 = arith.constant 0 : index
      %40 = vector.load %arg5[%c0_31, %c0_32, %c0_33, %c0_34] : memref<1x1x4x1xf32, #tpu.memory_space<vmem>>, vector<1x1x4x1xf32>
      tpu.vector_store %arg5[%c0_31, %c0_32, %c0_33, %c0_34], %39 {strides = array<i32>} : memref<1x1x4x1xf32, #tpu.memory_space<vmem>>, vector<1x1x4x1xf32>,
      %cst_35 = arith.constant 0.000000e+00 : f32
      %41 = vector.broadcast %cst_35 : f32 to vector<1x1x4x1xf32>
      %c0_36 = arith.constant 0 : index
      %c0_37 = arith.constant 0 : index
      %c0_38 = arith.constant 0 : index
      %c0_39 = arith.constant 0 : index
      %42 = vector.load %arg6[%c0_36, %c0_37, %c0_38, %c0_39] : memref<1x1x4x1xf32, #tpu.memory_space<vmem>>, vector<1x1x4x1xf32>
      tpu.vector_store %arg6[%c0_36, %c0_37, %c0_38, %c0_39], %41 {strides = array<i32>} : memref<1x1x4x1xf32, #tpu.memory_space<vmem>>, vector<1x1x4x1xf32>,
    } else {
    }
    %c0 = arith.constant 0 : index
    %c0_1 = arith.constant 0 : index
    %c0_2 = arith.constant 0 : index
    %c0_3 = arith.constant 0 : index
    %3 = vector.load %arg3[%c0, %c0_1, %c0_2, %c0_3] : memref<1x4x16x16xf32, #tpu.memory_space<vmem>>, vector<1x4x16x16xf32>
    %4 = vector.shape_cast %3 : vector<1x4x16x16xf32> to vector<4x16x16xf32>
    %c0_4 = arith.constant 0 : index
    %c0_5 = arith.constant 0 : index
    %c0_6 = arith.constant 0 : index
    %5 = vector.load %arg4[%c0_4, %c0_5, %c0_6] : memref<1x16x16xi32, #tpu.memory_space<vmem>>, vector<1x16x16xi32>
    %6 = vector.shape_cast %5 : vector<1x16x16xi32> to vector<16x16xi32>
    %cst = arith.constant dense<0xFF800000> : vector<16x16xf32>
    %7 = vector.multi_reduction <maximumf>, %4, %cst [0] : vector<4x16x16xf32> to vector<16x16xf32>
    %8 = vector.shape_cast %7 : vector<16x16xf32> to vector<1x16x16xf32>
    %9 = vector.broadcast %8 : vector<1x16x16xf32> to vector<4x16x16xf32>
    %10 = arith.subf %4, %9 : vector<4x16x16xf32>
    %11 = math.exp %10 : vector<4x16x16xf32>
    %cst_7 = arith.constant dense<0.000000e+00> : vector<16x16xf32>
    %12 = vector.multi_reduction <add>, %11, %cst_7 [0] : vector<4x16x16xf32> to vector<16x16xf32>
    %13 = tpu.reciprocal %12 {approx = true} : vector<16x16xf32> -> vector<16x16xf32>
    %14 = vector.shape_cast %13 : vector<16x16xf32> to vector<1x16x16xf32>
    %15 = vector.broadcast %14 : vector<1x16x16xf32> to vector<4x16x16xf32>
    %16 = arith.mulf %11, %15 : vector<4x16x16xf32>
    %17 = tpu.iota {dimensions = array<i32: 0>} : vector<4x16x16xi32>
    %18 = vector.shape_cast %6 : vector<16x16xi32> to vector<1x16x16xi32>
    %19 = vector.broadcast %18 : vector<1x16x16xi32> to vector<4x16x16xi32>
    %20 = arith.cmpi eq, %19, %17 : vector<4x16x16xi32>
    %cst_8 = arith.constant 0.000000e+00 : f32
    %21 = vector.broadcast %cst_8 : f32 to vector<4x16x16xf32>
    %22 = arith.select %20, %16, %21 : vector<4x16x16xi1>, vector<4x16x16xf32>
    %cst_9 = arith.constant 1.000000e+00 : f32
    %23 = vector.broadcast %cst_9 : f32 to vector<4x16x16xf32>
    %24 = arith.select %20, %23, %16 : vector<4x16x16xi1>, vector<4x16x16xf32>
    %cst_10 = arith.constant dense<0.000000e+00> : vector<4x16xf32>
    %25 = vector.multi_reduction <add>, %22, %cst_10 [2] : vector<4x16x16xf32> to vector<4x16xf32>
    %cst_11 = arith.constant dense<0.000000e+00> : vector<4xf32>
    %26 = vector.multi_reduction <add>, %25, %cst_11 [1] : vector<4x16xf32> to vector<4xf32>
    %27 = vector.shape_cast %26 : vector<4xf32> to vector<4x1xf32>
    %cst_12 = arith.constant dense<0.000000e+00> : vector<4x16xf32>
    %28 = vector.multi_reduction <add>, %24, %cst_12 [2] : vector<4x16x16xf32> to vector<4x16xf32>
    %cst_13 = arith.constant dense<0.000000e+00> : vector<4xf32>
    %29 = vector.multi_reduction <add>, %28, %cst_13 [1] : vector<4x16xf32> to vector<4xf32>
    %30 = vector.shape_cast %29 : vector<4xf32> to vector<4x1xf32>
    %c0_14 = arith.constant 0 : index
    %c0_15 = arith.constant 0 : index
    %c0_16 = arith.constant 0 : index
    %c0_17 = arith.constant 0 : index
    %31 = vector.load %arg5[%c0_14, %c0_15, %c0_16, %c0_17] : memref<1x1x4x1xf32, #tpu.memory_space<vmem>>, vector<1x1x4x1xf32>
    %32 = vector.shape_cast %27 : vector<4x1xf32> to vector<1x1x4x1xf32>
    %33 = arith.addf %31, %32 : vector<1x1x4x1xf32>
    %c0_18 = arith.constant 0 : index
    %c0_19 = arith.constant 0 : index
    %c0_20 = arith.constant 0 : index
    %c0_21 = arith.constant 0 : index
    %34 = vector.load %arg5[%c0_18, %c0_19, %c0_20, %c0_21] : memref<1x1x4x1xf32, #tpu.memory_space<vmem>>, vector<1x1x4x1xf32>
    tpu.vector_store %arg5[%c0_18, %c0_19, %c0_20, %c0_21], %33 {strides = array<i32>} : memref<1x1x4x1xf32, #tpu.memory_space<vmem>>, vector<1x1x4x1xf32>,
    %c0_22 = arith.constant 0 : index
    %c0_23 = arith.constant 0 : index
    %c0_24 = arith.constant 0 : index
    %c0_25 = arith.constant 0 : index
    %35 = vector.load %arg6[%c0_22, %c0_23, %c0_24, %c0_25] : memref<1x1x4x1xf32, #tpu.memory_space<vmem>>, vector<1x1x4x1xf32>
    %36 = vector.shape_cast %30 : vector<4x1xf32> to vector<1x1x4x1xf32>
    %37 = arith.addf %35, %36 : vector<1x1x4x1xf32>
    %c0_26 = arith.constant 0 : index
    %c0_27 = arith.constant 0 : index
    %c0_28 = arith.constant 0 : index
    %c0_29 = arith.constant 0 : index
    %38 = vector.load %arg6[%c0_26, %c0_27, %c0_28, %c0_29] : memref<1x1x4x1xf32, #tpu.memory_space<vmem>>, vector<1x1x4x1xf32>
    tpu.vector_store %arg6[%c0_26, %c0_27, %c0_28, %c0_29], %37 {strides = array<i32>} : memref<1x1x4x1xf32, #tpu.memory_space<vmem>>, vector<1x1x4x1xf32>,
    return
  }
  func.func @transform_0(%arg0: i32, %arg1: i32, %arg2: i32) -> (i32, i32, i32, i32) {
    %c1_i32 = arith.constant 1 : i32
    %0 = arith.muli %arg0, %c1_i32 : i32
    %1 = arith.addi %0, %arg2 : i32
    %c0_i32 = arith.constant 0 : i32
    %c0_i32_0 = arith.constant 0 : i32
    %c0_i32_1 = arith.constant 0 : i32
    return %arg1, %c0_i32, %1, %c0_i32_0 : i32, i32, i32, i32
  }
  func.func @transform_1(%arg0: i32, %arg1: i32, %arg2: i32) -> (i32, i32, i32) {
    %c1_i32 = arith.constant 1 : i32
    %0 = arith.muli %arg0, %c1_i32 : i32
    %1 = arith.addi %0, %arg2 : i32
    %c0_i32 = arith.constant 0 : i32
    %c0_i32_0 = arith.constant 0 : i32
    return %arg1, %1, %c0_i32 : i32, i32, i32
  }
  func.func @transform_2(%arg0: i32, %arg1: i32, %arg2: i32) -> (i32, i32, i32, i32) {
    %c0_i32 = arith.constant 0 : i32
    %c0_i32_0 = arith.constant 0 : i32
    %c0_i32_1 = arith.constant 0 : i32
    return %arg0, %arg1, %c0_i32, %c0_i32_0 : i32, i32, i32, i32
  }
  func.func @transform_3(%arg0: i32, %arg1: i32, %arg2: i32) -> (i32, i32, i32, i32) {
    %c0_i32 = arith.constant 0 : i32
    %c0_i32_0 = arith.constant 0 : i32
    %c0_i32_1 = arith.constant 0 : i32
    return %arg0, %arg1, %c0_i32, %c0_i32_0 : i32, i32, i32, i32
  }
}

</mosaic_0001>

<bundles_post_ra>
// kernel: tpu_custom_call.1
= control target key start
LH: loop header
LB: loop body
LE: loop exit
PB: predicated region body
PF: predicated region fallthrough
CT: control target
= control target key end

     0   :  { %9 = vsyncpa [#allocation3], 0  ;;  %s1240_s0 = inlined_call_operand.hbm [shape: f32[2,4,16,16], index: 0, kind: input, shape index: {}]   ;;  %s1241_s1 = inlined_call_operand.hbm [shape: s32[2,16,16], index: 1, kind: input, shape index: {}]   ;;  %s1242_s2 = inlined_call_operand.vmem [shape: f32[1,2,4,1], index: 2, kind: output, shape index: {0}]   ;;  %s1243_s3 = inlined_call_operand.vmem [shape: f32[1,2,4,1], index: 3, kind: output, shape index: {1}]  }
   0x1   :  { %11 = vsyncpa [#allocation3 + $0x1], 0 }
   0x2   :  { %12 = vsyncpa [#allocation5], 0 }
   0x3   :  { %14 = vsyncpa [#allocation5 + $0x1], 0  ;;  %s979_s12 = smov 0   ;;  %s981_s13 = smov 0  }
   0x4   :  { %s983_s14 = smov 0   ;;  %s985_s15 = smov 0  }
   0x5   :  { %s987_s16 = smov 0   ;;  %s989_s17 = smov 0  }
   0x6 LB: > { %s736_s18 = sadd.s32 4294967295, %s952_s17   ;;  %s35_s19 = sadd.s32 1, %s948_s16  ;;  %s952_s17 = sphi %s989_s17, %s20_s17   ;;  %s948_s16 = sphi %s987_s16, %s1254_s16   ;;  %s944_s15 = sphi %s985_s15, %s1253_s15   ;;  %s940_s14 = sphi %s983_s14, %s1252_s14   ;;  %s936_s13 = sphi %s981_s13, %s1251_s13   ;;  %s932_s12 = sphi %s979_s12, %s1250_s12  }
   0x7   : > { %p37_p0 = scmp.ge.s32.totalorder %s35_s19, 2  ;;  %s50_s20 = sadd.s32 1, %s940_s14 }
   0x8   : > { %p57_p1 = scmp.ne.s32.totalorder %s940_s14, %s936_s13  ;;  %p58_p2 = scmp.eq.s32.totalorder %s952_s17, 0 }
   0x9   : > { %s1256_s19 = smov (%p37_p0, %s35_s19), 0  ;;  %p63_p4 = scmp.ne.s32.totalorder %s936_s13, %s932_s12 }
   0xa   : > { %p1015_p3 = por %p58_p2, %p57_p1  ;;  %s45_s22 = ssub.s32 %s948_s16, %s1256_s19 }
   0xb   : > { %p64_p5 = scmp.eq.s32.totalorder %s736_s18, 0  ;;  %p48_p6 = scmp.eq.s32.totalorder %s45_s22, 0 }
   0xc   : > { %p766_p8 = scmp.lt.s32.totalorder %s952_s17, 2  ;;  %s1031_s25 = sand.u32 1, %s940_s14  }
   0xd   : > { %p1022_p7 = por %p64_p5, %p63_p4  ;;  %s753_s26 = sshll.u32 %s948_s16, 10 }
   0xe   : > { %s1028_s24 = scalar_select %p48_p6, %s940_s14, %s50_s20  }
   0xf   : > { %s1246_s23 = scalar_select %p1022_p7, 1, 0 }
  0x10   : > { %s740_s27 = sshll.u32 %s1031_s25, 6  ;;  %s1038_s30 = scalar_lea.hbm %s1240_s0, %s753_s26 }
  0x11   : > { %s177_s4 = scalar_lea.vmem [#allocation2], %s740_s27  ;;  %p1042_p9 = pnand %p766_p8, %p1015_p3 }
  0x12   : > { %s187_s5 = sshll.u32 %s177_s4, 4  ;;  %s174_s7 = scalar_lea.sflag [#allocation3], %s1031_s25  ;;  %s1046_s5 = int_to_ptr.vmem [resolvable:$true] %s187_s5 }
  0x13   : > { %s838_s8 = scalar_lea.hbm %s1038_s30, 1024  ;;  %p840_p11 = pneg %p1042_p9 }
  0x14   : > { %p839_p10 = scmp.ne.s32.totalorder %s1038_s30, %s838_s8  ;;  %s843_s11 = scalar_lea.hbm %s1240_s0, 2048 }
  0x15   : > { %p844_p0 = scmp.lt.u32.totalorder %s1038_s30, %s1240_s0  ;;  %p845_p1 = scmp.lt.u32.totalorder %s843_s11, %s838_s8 }
  0x16   : > { %p841_p12 = pnand %p840_p11, %p839_p10  ;;  %p847_p3 = scmp.lt.u32.totalorder %s838_s8, %s1038_s30 }
  0x17   : > { %p846_p2 = por %p845_p1, %p844_p0 }
  0x18   : > { %p842_p13 = pneg %p841_p12 }
  0x19   : > { %p848_p4 = por %p847_p3, %p846_p2 }
  0x1b   : > { %p849_p5 = pnand %p848_p4, %p842_p13 }
  0x1d   : > { %852 = shalt.err (!%p849_p5)
}
  0x1e   : > { %s853_s20 = scalar_lea.vmem %s1046_s5, 1024  ;;  %s954_s21 = smov [#allocation2]  }
  0x1f   : > { %p854_p6 = scmp.ne.s32.totalorder %s1046_s5, %s853_s20  ;;  %s858_s22 = sshll.u32 %s954_s21, 4  ;;  %s859_s22 = int_to_ptr.vmem [resolvable:$false] %s858_s22 }
  0x20   : > { %s860_s26 = scalar_lea.vmem %s859_s22, 2048  ;;  %p861_p12 = scmp.lt.s32.totalorder %s1046_s5, %s859_s22 }
  0x21   : > { %p856_p8 = pnand %p854_p6, %p840_p11  ;;  %p862_p0 = scmp.lt.s32.totalorder %s860_s26, %s853_s20 }
  0x23   : > { %p857_p10 = pneg %p856_p8  ;;  %p863_p1 = por %p862_p0, %p861_p12 }
  0x25   : > { %p864_p2 = pnand %p863_p1, %p857_p10 }
  0x27   : > { %867 = shalt.err (!%p864_p2)
}
  0x28   : > { %s955_s27 = smov 128   ;;  %s956_s28 = smov 8  }
  0x29   : > { %762 = dma.hbm_to_vmem [thread:$0]  (!%p1042_p9), %s1038_s30, 1024, %s1046_s5, %s174_s7, %s955_s27, %s955_s27, %s956_s28  }
  0x2a   : > { %p746_p13 = scmp.ge.s32.totalorder %s952_s17, 1  ;;  %p219_p3 = scmp.lt.s32.totalorder %s952_s17, 3 }
  0x2b   : > { %s743_s29 = sshll.u32 %s1031_s25, 4  ;;  %s754_s8 = sshll.u32 %s948_s16, 8 }
  0x2c   : > { %p1082_p4 = pnand %p746_p13, %p219_p3  ;;  %s201_s9 = scalar_lea.vmem [#allocation4], %s743_s29 }
  0x2d   : > { %s211_s10 = sshll.u32 %s201_s9, 4  ;;  %s1090_s18 = scalar_lea.hbm %s1241_s1, %s754_s8  ;;  %s1092_s10 = int_to_ptr.vmem [resolvable:$true] %s211_s10 }
  0x2e   : > { %s198_s30 = scalar_lea.sflag [#allocation5], %s1031_s25  ;;  %s868_s5 = scalar_lea.hbm %s1090_s18, 256 }
  0x2f   : > { %p869_p5 = scmp.ne.s32.totalorder %s1090_s18, %s868_s5  ;;  %s873_s21 = scalar_lea.hbm %s1241_s1, 512 }
  0x30   : > { %p874_p10 = scmp.lt.u32.totalorder %s1090_s18, %s1241_s1  ;;  %p875_p12 = scmp.lt.u32.totalorder %s873_s21, %s868_s5 }
  0x31   : > { %p871_p6 = pnand %p869_p5, %p840_p11  ;;  %p877_p1 = scmp.lt.u32.totalorder %s868_s5, %s1090_s18 }
  0x32   : > { %p876_p0 = por %p875_p12, %p874_p10 }
  0x33   : > { %p872_p8 = pneg %p871_p6 }
  0x34   : > { %p878_p2 = por %p877_p1, %p876_p0 }
  0x36   : > { %p879_p13 = pnand %p878_p2, %p872_p8 }
  0x38   : > { %882 = shalt.err (!%p879_p13)
}
  0x39   : > { %s883_s29 = scalar_lea.vmem %s1092_s10, 256  ;;  %s957_s8 = smov [#allocation4]  }
  0x3a   : > { %p884_p3 = scmp.ne.s32.totalorder %s1092_s10, %s883_s29  ;;  %s888_s9 = sshll.u32 %s957_s8, 4  ;;  %s889_s9 = int_to_ptr.vmem [resolvable:$false] %s888_s9 }
  0x3b   : > { %s890_s11 = scalar_lea.vmem %s889_s9, 512  ;;  %p891_p7 = scmp.lt.s32.totalorder %s1092_s10, %s889_s9 }
  0x3c   : > { %p886_p5 = pnand %p884_p3, %p840_p11  ;;  %p892_p10 = scmp.lt.s32.totalorder %s890_s11, %s883_s29 }
  0x3e   : > { %p887_p6 = pneg %p886_p5  ;;  %p893_p12 = por %p892_p10, %p891_p7 }
  0x40   : > { %p894_p0 = pnand %p893_p12, %p887_p6 }
  0x42   : > { %897 = shalt.err (!%p894_p0)
}
  0x43   : > { %765 = dma.hbm_to_vmem [thread:$0]  (!%p1042_p9), %s1090_s18, 256, %s1092_s10, %s198_s30, %s955_s27, %s955_s27, %s956_s28  }
  0x44   : > { %223 = sbr.rel (%p1082_p4) target bundleno = 444 (0x1bc), region = 28  ;;  %s225_s12 = sand.u32 (!%p1082_p4), 1, %s936_s13  }
  0x45   : > { %s747_s5 = sshll.u32 (!%p1082_p4), %s225_s12, 6  ;;  %s226_s7 = scalar_lea.sflag (!%p1082_p4), [#allocation3], %s225_s12 }
  0x46   : > { %s229_s20 = scalar_lea.vmem (!%p1082_p4), [#allocation2], %s747_s5  ;;  %p1249_p7 = scmp.ne.s32.totalorder (!%p1082_p4), %s1246_s23, 0 }
  0x4b   : > { %923 = dma.done.wait (%p1249_p7), %s226_s7, 1024  }
  0x4c   : > { %925 = vsyncadd (%p1249_p7), %s226_s7, 4294966272  ;;  %s748_s6 = sshll.u32 %s225_s12, 4  ;;  %s235_s25 = scalar_lea.sflag [#allocation5], %s225_s12 }
  0x4d   : > { %s1130_s21 = scalar_lea.vmem [#allocation4], %s748_s6 }
  0x4e   : > { %927 = dma.done.wait (%p1249_p7), %s235_s25, 256  }
  0x4f   : > { %929 = vsyncadd (%p1249_p7), %s235_s25, 4294967040  ;;  %vm314_vm0 = vcmask 130048   ;;  %v304_v0 = vld [vmem:[%s229_s20] sm:$0xff]  ;;  %v306_v1 = vld [vmem:[%s229_s20 + $0x10] sm:$0xff]  ;;  %p283_p9 = scmp.lt.s32.totalorder %s944_s15, 1  ;;  %vm301_vm9 = vcmask 3072  }
  0x50   : > { %v308_v2 = vld [vmem:[%s229_s20 + $0x20] sm:$0xff]  ;;  %v310_v3 = vld [vmem:[%s229_s20 + $0x30] sm:$0xff]  ;;  %v315_v4 = vsel %vm314_vm0, %v304_v0, -inf  ;;  %v316_v5 = vsel %vm314_vm0, %v306_v1, -inf  ;;  %v305_v7 = vld [vmem:[%s229_s20 + $0x8] sm:$0xff]  ;;  %vm444_vm10 = vcmask 130112  }
  0x51   : > { %v317_v6 = vsel %vm314_vm0, %v308_v2, -inf  ;;  %v319_v9 = vsel %vm314_vm0, %v310_v3, -inf  ;;  %v307_v10 = vld [vmem:[%s229_s20 + $0x18] sm:$0xff]  ;;  %v309_v11 = vld [vmem:[%s229_s20 + $0x28] sm:$0xff]  ;;  %v322_v14 = vsel %vm314_vm0, %v305_v7, -inf  ;;  %v312_v60 = vld [vmem:[%s1130_s21] sm:$0xff] }
  0x52   : > { %v318_v8 = vmax.f32 %v315_v4, %v317_v6  ;;  %v311_v12 = vld [vmem:[%s229_s20 + $0x38] sm:$0xff]  ;;  %v320_v13 = vmax.f32 %v316_v5, %v319_v9  ;;  %v323_v15 = vsel %vm314_vm0, %v307_v10, -inf  ;;  %v324_v16 = vsel %vm314_vm0, %v309_v11, -inf  ;;  %s1258_s15 = smov (!%p283_p9, %s944_s15), 1 }
  0x53   : > { %v325_v17 = vmax.f32 %v322_v14, %v324_v16  ;;  %v326_v18 = vsel %vm314_vm0, %v311_v12, -inf  ;;  %vm379_vm1 = vcmp.eq.s32.totalorder %v312_v60, 1  ;;  %vm377_vm2 = vcmp.eq.s32.totalorder %v312_v60, 0  ;;  %s749_s23 = sshll.u32 %s1258_s15, 2 }
  0x54   : > { %v321_v19 = vmax.f32 %v318_v8, %v320_v13  ;;  %v327_v20 = vmax.f32 %v323_v15, %v326_v18  ;;  %vm381_vm6 = vcmp.eq.s32.totalorder %v312_v60, 2  ;;  %vm383_vm8 = vcmp.eq.s32.totalorder %v312_v60, 3  ;;  %s1190_s4 = scalar_lea.vmem %s1242_s2, %s749_s23  ;;  %s296_s30 = scalar_lea.vmem %s1243_s3, %s749_s23 }
  0x55   : > { %vm473_vm11 = vcmask 1041409   ;;  %vm475_vm12 = vcmask 1042434   ;;  %vm477_vm13 = vcmask 1043459   ;;  %vm480_vm14 = vcmask 125952  }
  0x56   : > { %v329_v21 = vsub.f32 %v304_v0, %v321_v19  ;;  %v331_v22 = vsub.f32 %v306_v1, %v321_v19  ;;  %v333_v23 = vsub.f32 %v308_v2, %v321_v19  ;;  %v335_v24 = vsub.f32 %v310_v3, %v321_v19  ;;  %v313_v0 = vld [vmem:[%s1130_s21 + $0x8] sm:$0xff] }
  0x57   : > { %v328_v25 = vmax.f32 %v325_v17, %v327_v20  ;;  %vm380_vm3 = vcmp.eq.s32.totalorder %v313_v0, 1  ;;  %vm378_vm4 = vcmp.eq.s32.totalorder %v313_v0, 0  ;;  %vm382_vm5 = vcmp.eq.s32.totalorder %v313_v0, 2 }
  0x58   : > { %v337_v26 = vmul.f32 1.442695, %v329_v21  ;;  %v341_v27 = vmul.f32 1.442695, %v331_v22  ;;  %v345_v28 = vmul.f32 1.442695, %v333_v23 }
  0x59   : > { %v349_v29 = vmul.f32 1.442695, %v335_v24  ;;  %v330_v30 = vsub.f32 %v305_v7, %v328_v25  ;;  %v332_v31 = vsub.f32 %v307_v10, %v328_v25  ;;  %v334_v32 = vsub.f32 %v309_v11, %v328_v25 }
  0x5a   : > { %818 = vpow2.f32 %v337_v26  ;;  %v336_v33 = vsub.f32 %v311_v12, %v328_v25  ;;  %vm384_vm7 = vcmp.eq.s32.totalorder %v313_v0, 3 }
  0x5b   : > { %820 = vpow2.f32 %v341_v27  ;;  %v339_v34 = vmul.f32 1.442695, %v330_v30  ;;  %v343_v35 = vmul.f32 1.442695, %v332_v31  ;;  %v347_v36 = vmul.f32 1.442695, %v334_v32 }
  0x5c   : > { %822 = vpow2.f32 %v345_v28  ;;  %v351_v37 = vmul.f32 1.442695, %v336_v33 }
  0x5d   : > { %824 = vpow2.f32 %v349_v29 }
  0x5e   : > { %826 = vpow2.f32 %v339_v34 }
  0x5f   : > { %828 = vpow2.f32 %v343_v35 }
  0x60   : > { %830 = vpow2.f32 %v347_v36 }
  0x61   : > { %832 = vpow2.f32 %v351_v37 }
  0x64   : > { %v819_v38 = vpop.eup %818 }
  0x65   : > { %v821_v39 = vpop.eup %820  ;;  %v353_v40 = vsel %vm314_vm0, %v819_v38, 0.0 }
  0x66   : > { %v823_v41 = vpop.eup %822  ;;  %v354_v42 = vsel %vm314_vm0, %v821_v39, 0.0 }
  0x67   : > { %v1146_v43 = vpop.eup %824  ;;  %v355_v44 = vadd.f32 %v354_v42, %v353_v40  ;;  %v356_v45 = vsel %vm314_vm0, %v823_v41, 0.0  ;;  %v958_v40 = vmov 0.0  }
  0x68   : > { %v827_v46 = vpop.eup %826  ;;  %v358_v47 = vsel %vm314_vm0, %v1146_v43, 0.0  ;;  %302 = vst.msk [vmem:[%s1190_s4] sm:$0xf] %vm301_vm9, %v958_v40  ;;  %303 = vst.msk [vmem:[%s296_s30] sm:$0xf] %vm301_vm9, %v958_v40 }
  0x69   : > { %v829_v48 = vpop.eup %828  ;;  %v357_v49 = vadd.f32 %v356_v45, %v355_v44  ;;  %v360_v50 = vsel %vm314_vm0, %v827_v46, 0.0  ;;  %v433_v45 = vlaneseq }
  0x6a   : > { %v831_v51 = vpop.eup %830  ;;  %v361_v52 = vsel %vm314_vm0, %v829_v48, 0.0 }
  0x6b   : > { %v833_v53 = vpop.eup %832  ;;  %v359_v54 = vadd.f32 %v358_v47, %v357_v49  ;;  %v362_v55 = vadd.f32 %v361_v52, %v360_v50  ;;  %v363_v56 = vsel %vm314_vm0, %v831_v51, 0.0  ;;  %v436_v52 = vshrl.u32 %v433_v45, 7 }
  0x6c   : > { %v365_v57 = vsel %vm314_vm0, %v833_v53, 0.0 }
  0x6d   : > { %834 = vrcp.f32 %v359_v54  ;;  %v364_v58 = vadd.f32 %v363_v56, %v362_v55 }
  0x6f   : > { %v366_v59 = vadd.f32 %v365_v57, %v364_v58 }
  0x71   : > { %836 = vrcp.f32 %v366_v59 }
  0x77   : > { %v835_v61 = vpop.eup %834 }
  0x78   : > { %v371_v62 = vmul.f32 %v835_v61, %v821_v39  ;;  %v369_v63 = vmul.f32 %v835_v61, %v819_v38  ;;  %v373_v19 = vmul.f32 %v835_v61, %v823_v41  ;;  %v375_v29 = vmul.f32 %v835_v61, %v1146_v43 }
  0x7a   : > { %v387_v1 = vsel %vm379_vm1, %v371_v62, 0.0  ;;  %v385_v2 = vsel %vm377_vm2, %v369_v63, 0.0  ;;  %v393_v11 = vsel %vm377_vm2, 1.0, %v369_v63  ;;  %v395_v17 = vsel %vm379_vm1, 1.0, %v371_v62 }
  0x7b   : > { %v837_v3 = vpop.eup %836  ;;  %v407_v4 = vsel %vm314_vm0, %v387_v1, 0.0  ;;  %v401_v5 = vsel %vm314_vm0, %v385_v2, 0.0  ;;  %v484_v15 = vsel %vm314_vm0, %v393_v11, 0.0  ;;  %v490_v21 = vsel %vm314_vm0, %v395_v17, 0.0 }
  0x7c   : > { %408 = vadd.xlane.f32.xlu1 %v407_v4  ;;  %402 = vadd.xlane.f32.xlu0 %v401_v5  ;;  %v372_v6 = vmul.f32 %v837_v3, %v829_v48  ;;  %v370_v7 = vmul.f32 %v837_v3, %v827_v46  ;;  %v374_v18 = vmul.f32 %v837_v3, %v831_v51  ;;  %v389_v23 = vsel %vm381_vm6, %v373_v19, 0.0 }
  0x7d   : > { %v413_v25 = vsel %vm314_vm0, %v389_v23, 0.0  ;;  %v397_v27 = vsel %vm381_vm6, 1.0, %v373_v19  ;;  %v376_v28 = vmul.f32 %v837_v3, %v833_v53  ;;  %v391_v33 = vsel %vm383_vm8, %v375_v29, 0.0 }
  0x7e   : > { %v388_v8 = vsel %vm380_vm3, %v372_v6, 0.0  ;;  %v386_v9 = vsel %vm378_vm4, %v370_v7, 0.0  ;;  %v394_v10 = vsel %vm378_vm4, 1.0, %v370_v7  ;;  %v396_v16 = vsel %vm380_vm3, 1.0, %v372_v6 }
  0x7f   : > { %v410_v12 = vsel %vm314_vm0, %v388_v8, 0.0  ;;  %v404_v13 = vsel %vm314_vm0, %v386_v9, 0.0  ;;  %v487_v14 = vsel %vm314_vm0, %v394_v10, 0.0  ;;  %v493_v20 = vsel %vm314_vm0, %v396_v16, 0.0 }
  0x80   : > { %411 = vadd.xlane.f32.xlu1 %v410_v12  ;;  %405 = vadd.xlane.f32.xlu0 %v404_v13  ;;  %v390_v22 = vsel %vm382_vm5, %v374_v18, 0.0  ;;  %v398_v26 = vsel %vm382_vm5, 1.0, %v374_v18  ;;  %v496_v31 = vsel %vm314_vm0, %v397_v27, 0.0  ;;  %v392_v32 = vsel %vm384_vm7, %v376_v28, 0.0 }
  0x81   : > { %v416_v24 = vsel %vm314_vm0, %v390_v22, 0.0  ;;  %v499_v30 = vsel %vm314_vm0, %v398_v26, 0.0  ;;  %v422_v34 = vsel %vm314_vm0, %v392_v32, 0.0  ;;  %v419_v35 = vsel %vm314_vm0, %v391_v33, 0.0 }
  0x82   : > { %v400_v36 = vsel %vm384_vm7, 1.0, %v376_v28  ;;  %v399_v37 = vsel %vm383_vm8, 1.0, %v375_v29  ;;  %v434_v48 = vand.u32 127, %v433_v45 }
  0x83   : > { %v505_v38 = vsel %vm314_vm0, %v400_v36, 0.0  ;;  %v502_v39 = vsel %vm314_vm0, %v399_v37, 0.0 }
  0x84   : > { %488 = vadd.xlane.f32.xlu1 %v487_v14  ;;  %485 = vadd.xlane.f32.xlu0 %v484_v15  ;;  %v439_v49 = vadd.s32 4294967288, %v434_v48  ;;  %v437_v56 = vsub.s32 %v434_v48, %v436_v52 }
  0x86   : > { %v442_v53 = vsub.s32 %v439_v49, %v436_v52 }
  0x88   : > { %494 = vadd.xlane.f32.xlu1 %v493_v20  ;;  %491 = vadd.xlane.f32.xlu0 %v490_v21 }
  0x8c   : > { %417 = vadd.xlane.f32.xlu1 %v416_v24  ;;  %414 = vadd.xlane.f32.xlu0 %v413_v25 }
  0x90   : > { %500 = vadd.xlane.f32.xlu1 %v499_v30  ;;  %497 = vadd.xlane.f32.xlu0 %v496_v31  ;;  %v559_v31 = vld [vmem:[%s1190_s4] sm:$0xf] }
  0x94   : > { %423 = vadd.xlane.f32.xlu1 %v422_v34  ;;  %420 = vadd.xlane.f32.xlu0 %v419_v35  ;;  %v563_v34 = vld [vmem:[%s296_s30] sm:$0xf] }
  0x98   : > { %506 = vadd.xlane.f32.xlu1 %v505_v38  ;;  %503 = vadd.xlane.f32.xlu0 %v502_v39 }
 0x109   : > { %v409_v41 = vpop.xlane.xlu1 %408  ;;  %v403_v42 = vpop.xlane.xlu0 %402 }
 0x10a   : > { %v449_v63 = vrot.slane %v409_v41, %v437_v56  ;;  %v438_v0 = vrot.slane %v403_v42, %v437_v56 }
 0x10d   : > { %v412_v43 = vpop.xlane.xlu1 %411  ;;  %v406_v44 = vpop.xlane.xlu0 %405 }
 0x10e   : > { %v453_v57 = vrot.slane %v412_v43, %v442_v53  ;;  %v443_v58 = vrot.slane %v406_v44, %v442_v53 }
 0x110   : > { %v454_v1 = vsel %vm444_vm10, %v453_v57, %v449_v63  ;;  %v445_v2 = vsel %vm444_vm10, %v443_v58, %v438_v0 }
 0x111   : > { %v489_v46 = vpop.xlane.xlu1 %488  ;;  %v486_v47 = vpop.xlane.xlu0 %485  ;;  %v474_v14 = vsel %vm473_vm11, %v454_v1, %v445_v2 }
 0x112   : > { %v523_v10 = vrot.slane %v489_v46, %v442_v53  ;;  %v519_v11 = vrot.slane %v486_v47, %v437_v56 }
 0x114   : > { %v524_v22 = vsel %vm444_vm10, %v523_v10, %v519_v11 }
 0x115   : > { %v495_v50 = vpop.xlane.xlu1 %494  ;;  %v492_v51 = vpop.xlane.xlu0 %491 }
 0x116   : > { %v532_v3 = vrot.slane %v495_v50, %v442_v53  ;;  %v528_v4 = vrot.slane %v492_v51, %v437_v56 }
 0x118   : > { %v533_v15 = vsel %vm444_vm10, %v532_v3, %v528_v4 }
 0x119   : > { %v418_v54 = vpop.xlane.xlu1 %417  ;;  %v415_v55 = vpop.xlane.xlu0 %414  ;;  %v552_v26 = vsel %vm473_vm11, %v533_v15, %v524_v22 }
 0x11a   : > { %v462_v59 = vrot.slane %v418_v54, %v442_v53  ;;  %v458_v60 = vrot.slane %v415_v55, %v437_v56 }
 0x11c   : > { %v463_v5 = vsel %vm444_vm10, %v462_v59, %v458_v60 }
 0x11d   : > { %v501_v61 = vpop.xlane.xlu1 %500  ;;  %v498_v62 = vpop.xlane.xlu0 %497  ;;  %v476_v17 = vsel %vm475_vm12, %v463_v5, %v474_v14 }
 0x11e   : > { %v541_v6 = vrot.slane %v501_v61, %v442_v53  ;;  %v537_v7 = vrot.slane %v498_v62, %v437_v56 }
 0x120   : > { %v542_v18 = vsel %vm444_vm10, %v541_v6, %v537_v7 }
 0x121   : > { %v424_v8 = vpop.xlane.xlu1 %423  ;;  %v421_v9 = vpop.xlane.xlu0 %420  ;;  %v553_v28 = vsel %vm475_vm12, %v542_v18, %v552_v26 }
 0x122   : > { %v471_v12 = vrot.slane %v424_v8, %v442_v53  ;;  %v467_v13 = vrot.slane %v421_v9, %v437_v56 }
 0x124   : > { %v472_v16 = vsel %vm444_vm10, %v471_v12, %v467_v13 }
 0x125   : > { %v507_v19 = vpop.xlane.xlu1 %506  ;;  %v504_v20 = vpop.xlane.xlu0 %503  ;;  %v478_v21 = vsel %vm477_vm13, %v472_v16, %v476_v17 }
 0x126   : > { %v550_v23 = vrot.slane %v507_v19, %v442_v53  ;;  %v546_v24 = vrot.slane %v504_v20, %v437_v56  ;;  %v481_v25 = vsel %vm480_vm14, %v478_v21, 0.0 }
 0x127   : > { %482 = vadd.xlane.f32.xlu0 %v481_v25 }
 0x128   : > { %v551_v27 = vsel %vm444_vm10, %v550_v23, %v546_v24 }
 0x129   : > { %v554_v29 = vsel %vm477_vm13, %v551_v27, %v553_v28 }
 0x12a   : > { %v556_v30 = vsel %vm480_vm14, %v554_v29, 0.0 }
 0x12b   : > { %557 = vadd.xlane.f32.xlu1 %v556_v30 }
 0x1b4   : > { %v483_v32 = vpop.xlane.xlu0 %482 }
 0x1b5   : > { %v560_v33 = vadd.f32 %v559_v31, %v483_v32 }
 0x1b7   : > { %562 = vst.msk [vmem:[%s1190_s4] sm:$0xf] %vm301_vm9, %v560_v33 }
 0x1b8   : > { %v558_v35 = vpop.xlane.xlu1 %557 }
 0x1b9   : > { %v564_v36 = vadd.f32 %v563_v34, %v558_v35 }
 0x1bb   : > { %565 = vst.msk [vmem:[%s296_s30] sm:$0xf] %vm301_vm9, %v564_v36 }
 0x1bc PF: > { %s20_s17 = sadd.s32 1, %s952_s17   ;;  %s1250_s12 = smov %s936_s13 }
 0x1bd   : > { %p17_p11 = scmp.ge.s32.totalorder %s20_s17, 4   ;;  %s1251_s13 = smov %s940_s14 }
 0x1be   : > { %s1252_s14 = smov %s1028_s24  ;;  %s1253_s15 = smov %s948_s16 }
 0x1bf   : > { %s1254_s16 = smov %s1256_s19  ;;  %19 = sbr.rel (!%p17_p11) target bundleno = 6 (0x6), region = 97 }
 0x1c6   :  { %615 = vsyncpa [#allocation3], 1 }
 0x1c7   :  { %617 = vsyncpa [#allocation3 + $0x1], 1 }
 0x1c8   :  { %618 = vsyncpa [#allocation5], 1 }
 0x1c9   :  { %620 = vsyncpa [#allocation5 + $0x1], 1 }

</bundles_post_ra>
